<compile_context>
chip_gen: v6e
topology: v6e:2x2x1
jax: 0.10.0
libtpu: 0.0.40
codegen_flags: <defaults>
</compile_context>

<pallas_src>
from functools import partial

import numpy as np
import jax
import jax.numpy as jnp
from jax.experimental import pallas as pl
from jax.experimental.pallas import tpu as pltpu

LANE = 128  # TPU lane width; the output block is written lane-dense.


# ---------------------------------------------------------------------------
# Pallas kernel: fused gather + masked-mean pool + classifier head per tile
# ---------------------------------------------------------------------------
def _score_kernel(ids_ref, mask_ref, emb_ref, w1_ref, b1_ref, w2_ref, scal_ref,
                  out_ref, *, sigmoid_normalize: bool):
    """One tile of TILE_N sequences:

    one-hot gather+pool (MXU) -> tanh dense (MXU) -> 1-logit head (VPU+XLU)
    -> optional sigmoid -> * (1/temperature) -> lane-dense store.
    """
    ids = ids_ref[...]                                    # (TILE_N, L) int32
    mask = mask_ref[...]                                  # (TILE_N, L) f32
    tile_n, seq_l = ids.shape
    vocab = emb_ref.shape[0]

    # Masked-mean weights with the denominator folded in (guard all-pad rows).
    denom = jnp.sum(mask, axis=1, keepdims=True)          # (TILE_N, 1)
    denom_safe = jnp.where(denom > 0.0, denom, 1.0)
    weights = mask * (1.0 / denom_safe)                   # (TILE_N, L)

    # Fused gather + pooling:
    #   counts[n, v] = sum_l weights[n, l] * [ids[n, l] == v]
    #   pooled       = counts @ E           (single MXU matmul)
    # -> the (N, L, H) gathered-embedding tensor never exists in HBM or VMEM.
    vocab_iota = jax.lax.broadcasted_iota(jnp.int32, (tile_n, seq_l, vocab), 2)
    onehot = (ids[:, :, None] == vocab_iota).astype(jnp.float32)
    counts = jnp.sum(onehot * weights[:, :, None], axis=1)        # (TILE_N, V)
    pooled = jnp.dot(counts, emb_ref[...],
                     preferred_element_type=jnp.float32)          # (TILE_N, H)

    h = jnp.tanh(
        jnp.dot(pooled, w1_ref[...], preferred_element_type=jnp.float32)
        + b1_ref[...]
    )                                                             # (TILE_N, H)

    # (H, 1) head as VPU multiply + cross-lane reduce: keeps the MXU for the
    # (TILE_N, H) @ (H, H) matmul and avoids a lane-1 MXU result.
    logits = jnp.sum(h * w2_ref[...], axis=-1, keepdims=True) + scal_ref[0]

    if sigmoid_normalize:                    # model_args.sigmoid_normalize
        logits = jax.nn.sigmoid(logits)
    logits = logits * scal_ref[1]            # * (1 / temperature)

    # Lane-dense, unmasked store: broadcast the per-row logit over 128 lanes;
    # the wrapper slices column 0.
    out_ref[...] = jnp.broadcast_to(logits, out_ref.shape)


# ---------------------------------------------------------------------------
# Wrappers
# ---------------------------------------------------------------------------
def score_passages(input_ids, attention_mask, params, *, temperature,
                   sigmoid_normalize=False, tile_n=8):
    """Synthetic `self.lm(**batch).logits` + sigmoid_normalize + /temperature.

    tile_n is the N-axis block size. At real reranker sizes pick 256-512 on
    v5e/v6e and roughly half that on v7x (64 MiB VMEM); here the toy shapes use
    tile_n=8 which already gives a multi-step pipelined grid.
    """
    n_seq, seq_l = input_ids.shape
    vocab, hidden = params["embedding"].shape

    num_tiles = pl.cdiv(n_seq, tile_n)
    n_pad = num_tiles * tile_n

    ids = input_ids.astype(jnp.int32)
    mask = attention_mask.astype(jnp.float32)
    if n_pad != n_seq:
        ids = jnp.pad(ids, ((0, n_pad - n_seq), (0, 0)))
        mask = jnp.pad(mask, ((0, n_pad - n_seq), (0, 0)))   # zero mask rows are guarded

    w2_row = params["w2"].reshape(1, hidden)                 # (1, H) for lane reduce
    scalars = jnp.stack([
        params["b2"].reshape(()),
        jnp.asarray(1.0 / temperature, dtype=jnp.float32),
    ]).astype(jnp.float32)                                   # [b2, 1/T] in SMEM

    out = pl.pallas_call(
        partial(_score_kernel, sigmoid_normalize=sigmoid_normalize),
        grid=(num_tiles,),
        out_shape=jax.ShapeDtypeStruct((n_pad, LANE), jnp.float32),
        in_specs=[
            pl.BlockSpec((tile_n, seq_l), lambda i: (i, 0)),       # token ids (tiled)
            pl.BlockSpec((tile_n, seq_l), lambda i: (i, 0)),       # attention mask (tiled)
            pl.BlockSpec((vocab, hidden), lambda i: (0, 0)),       # embedding (VMEM-resident)
            pl.BlockSpec((hidden, hidden), lambda i: (0, 0)),      # w1 (VMEM-resident)
            pl.BlockSpec((1, hidden), lambda i: (0, 0)),           # b1
            pl.BlockSpec((1, hidden), lambda i: (0, 0)),           # w2 row
            pl.BlockSpec(memory_space=pltpu.MemorySpace.SMEM),     # [b2, 1/T] scalars
        ],
        out_specs=pl.BlockSpec((tile_n, LANE), lambda i: (i, 0)),
        compiler_params=pltpu.CompilerParams(
            dimension_semantics=("parallel",)),                    # shard N over TCs (v7x)
    )(ids, mask, params["embedding"], params["w1"], params["b1"], w2_row, scalars)

    return out[:n_seq, :1]                                         # (N, 1)


def listwise_ce_loss(scores):
    """nn.CrossEntropyLoss(reduction='mean') with target label 0.

    scores is a tiny (B, P) array (fits in one vreg); a separate pallas_call
    would cost more in launch + HBM round-trip than the logsumexp itself, so it
    is computed in plain JAX (perf-review recommendation).
    """
    m = jnp.max(scores, axis=-1, keepdims=True)
    lse = m[:, 0] + jnp.log(jnp.sum(jnp.exp(scores - m), axis=-1))
    return jnp.mean(lse - scores[:, 0])


def cross_encoder_forward(batch, params, *, training, per_device_train_batch_size,
                          train_n_passages, temperature, sigmoid_normalize=False,
                          tile_n=8):
    """Mirrors CrossEncoder.forward (training and eval branches)."""
    logits = score_passages(
        batch["input_ids"], batch["attention_mask"], params,
        temperature=temperature if training else 1.0,
        sigmoid_normalize=sigmoid_normalize,
        tile_n=tile_n,
    )
    if training:
        scores = logits.reshape(per_device_train_batch_size, train_n_passages)
        loss = listwise_ce_loss(scores)
        return {"loss": loss, "logits": logits}
    else:
        return {"loss": None, "logits": logits}


# ---------------------------------------------------------------------------
# Pure-JAX reference (for correctness check only)
# ---------------------------------------------------------------------------
def reference_forward(batch, params, *, per_device_train_batch_size,
                      train_n_passages, temperature, sigmoid_normalize=False):
    emb = jnp.take(params["embedding"], batch["input_ids"], axis=0)
    mask = batch["attention_mask"].astype(jnp.float32)
    pooled = (emb * mask[:, :, None]).sum(1) / mask.sum(1, keepdims=True)
    h = jnp.tanh(pooled @ params["w1"] + params["b1"])
    logits = h @ params["w2"] + params["b2"]
    if sigmoid_normalize:
        logits = jax.nn.sigmoid(logits)
    logits = logits / temperature
    scores = logits.reshape(per_device_train_batch_size, train_n_passages)
    target = jnp.zeros((per_device_train_batch_size,), dtype=jnp.int32)
    logp = jax.nn.log_softmax(scores, axis=-1)
    loss = -jnp.mean(jnp.take_along_axis(logp, target[:, None], axis=1))
    return loss, logits


# ---------------------------------------------------------------------------
# Main
# ---------------------------------------------------------------------------
if __name__ == "__main__":
    # per_device_train_batch_size=4, train_n_passages=4 -> N=16 seqs, 2 grid tiles
    B, P = 4, 4
    N = B * P
    L = 8            # sequence length
    H = 128          # hidden size (lane-dense)
    V = 128          # vocab size
    TILE_N = 8
    TEMPERATURE = 0.05

    key = jax.random.PRNGKey(0)
    k_emb, k_w1, k_b1, k_w2, k_b2, k_ids, k_len = jax.random.split(key, 7)

    params = {
        "embedding": jax.random.normal(k_emb, (V, H), dtype=jnp.float32) * 0.02,
        "w1": jax.random.normal(k_w1, (H, H), dtype=jnp.float32) * 0.05,
        "b1": jax.random.normal(k_b1, (1, H), dtype=jnp.float32) * 0.01,
        "w2": jax.random.normal(k_w2, (H, 1), dtype=jnp.float32) * 0.05,
        "b2": jax.random.normal(k_b2, (1, 1), dtype=jnp.float32) * 0.01,
    }

    input_ids = jax.random.randint(k_ids, (N, L), 0, V, dtype=jnp.int32)
    lengths = jax.random.randint(k_len, (N,), 3, L + 1, dtype=jnp.int32)
    attention_mask = (jnp.arange(L)[None, :] < lengths[:, None]).astype(jnp.int32)
    batch = {"input_ids": input_ids, "attention_mask": attention_mask}

    # Training branch, with and without sigmoid_normalize
    for sig in (False, True):
        out = cross_encoder_forward(
            batch, params, training=True,
            per_device_train_batch_size=B, train_n_passages=P,
            temperature=TEMPERATURE, sigmoid_normalize=sig, tile_n=TILE_N,
        )
        loss = jax.block_until_ready(out["loss"])
        logits = jax.block_until_ready(out["logits"])

        ref_loss, ref_logits = reference_forward(
            batch, params, per_device_train_batch_size=B, train_n_passages=P,
            temperature=TEMPERATURE, sigmoid_normalize=sig,
        )
        np.testing.assert_allclose(np.asarray(logits), np.asarray(ref_logits),
                                   rtol=1e-4, atol=1e-5)
        np.testing.assert_allclose(np.asarray(loss), np.asarray(ref_loss),
                                   rtol=1e-4, atol=1e-5)

    # Eval branch (no loss, no temperature scaling)
    eval_out = cross_encoder_forward(
        batch, params, training=False,
        per_device_train_batch_size=B, train_n_passages=P,
        temperature=TEMPERATURE, sigmoid_normalize=False, tile_n=TILE_N,
    )
    eval_logits = jax.block_until_ready(eval_out["logits"])
    _, ref_eval_logits = reference_forward(
        batch, params, per_device_train_batch_size=B, train_n_passages=P,
        temperature=1.0, sigmoid_normalize=False,
    )
    np.testing.assert_allclose(np.asarray(eval_logits), np.asarray(ref_eval_logits),
                               rtol=1e-4, atol=1e-5)

    print("KERNEL_OK")
</pallas_src>

<mosaic_0001>
module attributes {stable_mosaic.version = 11 : i64} {
  func.func @_score_kernel(%arg0: i32, %arg1: memref<8x8xi32, #tpu.memory_space<vmem>>, %arg2: memref<8x8xf32, #tpu.memory_space<vmem>>, %arg3: memref<128x128xf32, #tpu.memory_space<vmem>>, %arg4: memref<128x128xf32, #tpu.memory_space<vmem>>, %arg5: memref<1x128xf32, #tpu.memory_space<vmem>>, %arg6: memref<1x128xf32, #tpu.memory_space<vmem>>, %arg7: memref<2xf32, #tpu.memory_space<smem>>, %arg8: memref<8x128xf32, #tpu.memory_space<vmem>>) attributes {dimension_semantics = [#tpu.dimension_semantics<parallel>], iteration_bounds = array<i64: 2>, scalar_prefetch = 0 : i64, scratch_operands = 0 : i64, tpu.core_type = #tpu.core_type<tc>, window_params = [{transform_indices = @transform_0, window_bounds = array<i64: 8, 8>}, {transform_indices = @transform_1, window_bounds = array<i64: 8, 8>}, {pipeline_mode = #tpu.pipeline_mode<synchronous>, transform_indices = @transform_2, window_bounds = array<i64: 128, 128>}, {pipeline_mode = #tpu.pipeline_mode<synchronous>, transform_indices = @transform_3, window_bounds = array<i64: 128, 128>}, {pipeline_mode = #tpu.pipeline_mode<synchronous>, transform_indices = @transform_4, window_bounds = array<i64: 1, 128>}, {pipeline_mode = #tpu.pipeline_mode<synchronous>, transform_indices = @transform_5, window_bounds = array<i64: 1, 128>}, {transform_indices = @transform_6, window_bounds = array<i64: 2>}, {transform_indices = @transform_7, window_bounds = array<i64: 8, 128>}]} {
    %c0 = arith.constant 0 : index
    %c0_0 = arith.constant 0 : index
    %0 = vector.load %arg1[%c0, %c0_0] : memref<8x8xi32, #tpu.memory_space<vmem>>, vector<8x8xi32>
    %c0_1 = arith.constant 0 : index
    %c0_2 = arith.constant 0 : index
    %1 = vector.load %arg2[%c0_1, %c0_2] : memref<8x8xf32, #tpu.memory_space<vmem>>, vector<8x8xf32>
    %cst = arith.constant dense<0.000000e+00> : vector<8xf32>
    %2 = vector.multi_reduction <add>, %1, %cst [1] : vector<8x8xf32> to vector<8xf32>
    %3 = vector.shape_cast %2 : vector<8xf32> to vector<8x1xf32>
    %cst_3 = arith.constant 0.000000e+00 : f32
    %4 = vector.broadcast %cst_3 : f32 to vector<8x1xf32>
    %5 = arith.cmpf ogt, %3, %4 : vector<8x1xf32>
    %cst_4 = arith.constant 1.000000e+00 : f32
    %6 = vector.broadcast %cst_4 : f32 to vector<8x1xf32>
    %7 = arith.select %5, %3, %6 : vector<8x1xi1>, vector<8x1xf32>
    %cst_5 = arith.constant 1.000000e+00 : f32
    %8 = vector.broadcast %cst_5 : f32 to vector<8x1xf32>
    %9 = arith.divf %8, %7 : vector<8x1xf32>
    %10 = vector.broadcast %9 : vector<8x1xf32> to vector<8x8xf32>
    %11 = arith.mulf %1, %10 : vector<8x8xf32>
    %12 = tpu.iota {dimensions = array<i32: 2>} : vector<8x8x128xi32>
    %13 = vector.shape_cast %0 : vector<8x8xi32> to vector<8x8x1xi32>
    %14 = vector.broadcast %13 : vector<8x8x1xi32> to vector<8x8x128xi32>
    %15 = arith.cmpi eq, %14, %12 : vector<8x8x128xi32>
    %16 = arith.extui %15 : vector<8x8x128xi1> to vector<8x8x128xi32>
    %17 = arith.sitofp %16 : vector<8x8x128xi32> to vector<8x8x128xf32>
    %18 = vector.shape_cast %11 : vector<8x8xf32> to vector<8x8x1xf32>
    %19 = vector.broadcast %18 : vector<8x8x1xf32> to vector<8x8x128xf32>
    %20 = arith.mulf %17, %19 : vector<8x8x128xf32>
    %cst_6 = arith.constant dense<0.000000e+00> : vector<8x128xf32>
    %21 = vector.multi_reduction <add>, %20, %cst_6 [1] : vector<8x8x128xf32> to vector<8x128xf32>
    %c0_7 = arith.constant 0 : index
    %c0_8 = arith.constant 0 : index
    %22 = vector.load %arg3[%c0_7, %c0_8] : memref<128x128xf32, #tpu.memory_space<vmem>>, vector<128x128xf32>
    %cst_9 = arith.constant dense<0.000000e+00> : vector<8x128xf32>
    %23 = tpu.matmul %21, %22, %cst_9 {dimension_numbers = #tpu.dot_dimension_numbers<[1], [0], [0], [1], [0, 0, 1, 1], [], []>} : vector<8x128xf32>, vector<128x128xf32>, vector<8x128xf32> -> vector<8x128xf32>
    %c0_10 = arith.constant 0 : index
    %c0_11 = arith.constant 0 : index
    %24 = vector.load %arg4[%c0_10, %c0_11] : memref<128x128xf32, #tpu.memory_space<vmem>>, vector<128x128xf32>
    %cst_12 = arith.constant dense<0.000000e+00> : vector<8x128xf32>
    %25 = tpu.matmul %23, %24, %cst_12 {dimension_numbers = #tpu.dot_dimension_numbers<[1], [0], [0], [1], [0, 0, 1, 1], [], []>} : vector<8x128xf32>, vector<128x128xf32>, vector<8x128xf32> -> vector<8x128xf32>
    %c0_13 = arith.constant 0 : index
    %c0_14 = arith.constant 0 : index
    %26 = vector.load %arg5[%c0_13, %c0_14] : memref<1x128xf32, #tpu.memory_space<vmem>>, vector<1x128xf32>
    %27 = vector.broadcast %26 : vector<1x128xf32> to vector<8x128xf32>
    %28 = arith.addf %25, %27 : vector<8x128xf32>
    %29 = math.tanh %28 : vector<8x128xf32>
    %c0_15 = arith.constant 0 : index
    %c0_16 = arith.constant 0 : index
    %30 = vector.load %arg6[%c0_15, %c0_16] : memref<1x128xf32, #tpu.memory_space<vmem>>, vector<1x128xf32>
    %31 = vector.broadcast %30 : vector<1x128xf32> to vector<8x128xf32>
    %32 = arith.mulf %29, %31 : vector<8x128xf32>
    %cst_17 = arith.constant dense<0.000000e+00> : vector<8xf32>
    %33 = vector.multi_reduction <add>, %32, %cst_17 [1] : vector<8x128xf32> to vector<8xf32>
    %34 = vector.shape_cast %33 : vector<8xf32> to vector<8x1xf32>
    %c0_18 = arith.constant 0 : index
    %35 = memref.load %arg7[%c0_18] : memref<2xf32, #tpu.memory_space<smem>>
    %36 = vector.broadcast %35 : f32 to vector<8x1xf32>
    %37 = arith.addf %34, %36 : vector<8x1xf32>
    %c1 = arith.constant 1 : index
    %38 = memref.load %arg7[%c1] : memref<2xf32, #tpu.memory_space<smem>>
    %39 = vector.broadcast %38 : f32 to vector<8x1xf32>
    %40 = arith.mulf %37, %39 : vector<8x1xf32>
    %41 = vector.shape_cast %40 : vector<8x1xf32> to vector<8x1xf32>
    %42 = vector.broadcast %41 : vector<8x1xf32> to vector<8x128xf32>
    %c0_19 = arith.constant 0 : index
    %c0_20 = arith.constant 0 : index
    %43 = vector.load %arg8[%c0_19, %c0_20] : memref<8x128xf32, #tpu.memory_space<vmem>>, vector<8x128xf32>
    tpu.vector_store %arg8[%c0_19, %c0_20], %42 {strides = array<i32>} : memref<8x128xf32, #tpu.memory_space<vmem>>, vector<8x128xf32>,
    return
  }
  func.func @transform_0(%arg0: i32) -> (i32, i32) {
    %c0_i32 = arith.constant 0 : i32
    %c0_i32_0 = arith.constant 0 : i32
    return %arg0, %c0_i32 : i32, i32
  }
  func.func @transform_1(%arg0: i32) -> (i32, i32) {
    %c0_i32 = arith.constant 0 : i32
    %c0_i32_0 = arith.constant 0 : i32
    return %arg0, %c0_i32 : i32, i32
  }
  func.func @transform_2(%arg0: i32) -> (i32, i32) {
    %c0_i32 = arith.constant 0 : i32
    %c0_i32_0 = arith.constant 0 : i32
    %c0_i32_1 = arith.constant 0 : i32
    return %c0_i32, %c0_i32_0 : i32, i32
  }
  func.func @transform_3(%arg0: i32) -> (i32, i32) {
    %c0_i32 = arith.constant 0 : i32
    %c0_i32_0 = arith.constant 0 : i32
    %c0_i32_1 = arith.constant 0 : i32
    return %c0_i32, %c0_i32_0 : i32, i32
  }
  func.func @transform_4(%arg0: i32) -> (i32, i32) {
    %c0_i32 = arith.constant 0 : i32
    %c0_i32_0 = arith.constant 0 : i32
    %c0_i32_1 = arith.constant 0 : i32
    return %c0_i32, %c0_i32_0 : i32, i32
  }
  func.func @transform_5(%arg0: i32) -> (i32, i32) {
    %c0_i32 = arith.constant 0 : i32
    %c0_i32_0 = arith.constant 0 : i32
    %c0_i32_1 = arith.constant 0 : i32
    return %c0_i32, %c0_i32_0 : i32, i32
  }
  func.func @transform_6(%arg0: i32) -> i32 {
    %c0_i32 = arith.constant 0 : i32
    %c0_i32_0 = arith.constant 0 : i32
    return %c0_i32 : i32
  }
  func.func @transform_7(%arg0: i32) -> (i32, i32) {
    %c0_i32 = arith.constant 0 : i32
    %c0_i32_0 = arith.constant 0 : i32
    return %arg0, %c0_i32 : i32, i32
  }
}

</mosaic_0001>

<bundles_post_ra>
// kernel: tpu_custom_call.1
= control target key start
LH: loop header
LB: loop body
LE: loop exit
PB: predicated region body
PF: predicated region fallthrough
CT: control target
= control target key end

     0   :  { %12 = vsyncpa [#allocation3], 0  ;;  %s1496_s0 = inlined_call_operand.vmem [shape: s32[16,8], index: 0, kind: input, shape index: {}]   ;;  %s1497_s1 = inlined_call_operand.vmem [shape: f32[16,8], index: 1, kind: input, shape index: {}]   ;;  %s1498_s2 = inlined_call_operand.hbm [shape: f32[128,128], index: 2, kind: input, shape index: {}]   ;;  %s1499_s3 = inlined_call_operand.hbm [shape: f32[128,128], index: 3, kind: input, shape index: {}]   ;;  %s1500_s4 = inlined_call_operand.vmem [shape: f32[1,128], index: 4, kind: input, shape index: {}]   ;;  %s1501_s5 = inlined_call_operand.vmem [shape: f32[1,128], index: 5, kind: input, shape index: {}]   ;;  %s1502_s6 = inlined_call_operand.vmem [shape: f32[2], index: 6, kind: input, shape index: {}]   ;;  %s1503_s7 = inlined_call_operand.hbm [shape: f32[16,128], index: 7, kind: output, shape index: {}]  }
   0x1   :  { %13 = vsyncpa [#allocation7], 0 }
   0x2   :  { %14 = vsyncpa [#allocation5], 0 }
   0x3   :  { %15 = vsyncpa [#allocation4], 0 }
   0x4   :  { %17 = vsyncpa [#allocation4 + $0x1], 0  ;;  %s1278_s24 = smov 0   ;;  %s1280_s25 = smov 0  }
   0x5   :  { %s1282_s26 = smov 0   ;;  %s1284_s27 = smov 0  }
   0x6 LB: > { %s1299_s28 = sadd.s32 4294967295, %s1228_s27   ;;  %s879_s29 = sadd.s32 4294967294, %s1228_s27   ;;  %s1228_s27 = sphi %s1284_s27, %s1519_s27   ;;  %s1224_s26 = sphi %s1282_s26, %s1518_s26   ;;  %s1220_s25 = sphi %s1280_s25, %s1517_s25   ;;  %s1216_s24 = sphi %s1278_s24, %s1516_s24  }
   0x7   : > { %s1303_s30 = sadd.s32 1, %s1228_s27   ;;  %s187_s8 = sadd.s32 1, %s1224_s26 }
   0x8   : > { %s184_s9 = ssub.s32 %s1228_s27, %s1303_s30  ;;  %p197_p0 = scmp.ne.s32.totalorder %s1224_s26, %s1220_s25 }
   0x9   : > { %p185_p1 = scmp.eq.s32.totalorder %s184_s9, 0  ;;  %p198_p2 = scmp.eq.s32.totalorder %s1299_s28, 1 }
   0xa   : > { %p203_p3 = scmp.ne.s32.totalorder %s1220_s25, %s1216_s24  ;;  %p204_p4 = scmp.eq.s32.totalorder %s879_s29, 1 }
   0xb   : > { %s1314_s10 = scalar_select %p185_p1, %s1224_s26, %s187_s8  }
   0xc   : > { %p1316_p5 = por %p198_p2, %p197_p0  ;;  %p1320_p6 = por %p204_p4, %p203_p3 }
   0xd   : > { %p880_p7 = scmp.ge.s32.totalorder %s1228_s27, 1  ;;  %p211_p8 = scmp.lt.s32.totalorder %s1228_s27, 3 }
   0xe   : > { %s1506_s12 = scalar_select %p1320_p6, 1, 0 }
   0xf   : > { %p1504_p9 = scmp.eq.s32.totalorder %s1299_s28, 0  ;;  %p1327_p10 = pnand %p880_p7, %p211_p8 }
  0x10   : > { %s1230_s14 = smov [#allocation2]   ;;  %s1231_s17 = smov [#allocation6]  }
  0x11   : > { %s223_s15 = sshll.u32 %s1230_s14, 4  ;;  %p1025_p11 = pneg %p1327_p10  ;;  %s224_s15 = int_to_ptr.vmem [resolvable:$true] %s223_s15 }
  0x12   : > { %s236_s18 = sshll.u32 %s1231_s17, 4  ;;  %s256_s21 = sshll.u32 %s1502_s6, 4  ;;  %s237_s18 = int_to_ptr.vmem [resolvable:$true] %s236_s18  ;;  %s1342_s21 = int_to_ptr.vmem [resolvable:$true] %s256_s21 }
  0x13   : > { %p1335_p12 = pnand %p1504_p9, %p1025_p11  ;;  %s1100_s22 = scalar_lea.vmem %s224_s15, 2048 }
  0x14   : > { %p1101_p0 = scmp.ne.s32.totalorder %s224_s15, %s1100_s22  ;;  %p1108_p3 = scmp.lt.s32.totalorder %s224_s15, %s224_s15 }
  0x15   : > { %p1091_p13 = pneg %p1335_p12  ;;  %p1109_p4 = scmp.lt.s32.totalorder %s1100_s22, %s1100_s22 }
  0x17   : > { %p1103_p1 = pnand %p1101_p0, %p1091_p13  ;;  %p1110_p7 = por %p1109_p4, %p1108_p3 }
  0x19   : > { %p1104_p2 = pneg %p1103_p1 }
  0x1b   : > { %p1111_p8 = pnand %p1110_p7, %p1104_p2 }
  0x1d   : > { %1114 = shalt.err (!%p1111_p8)
}
  0x1e   : > { %s1232_s23 = smov 128   ;;  %s1233_s29 = smov 8  }
  0x1f   : > { %1028 = dma.hbm_to_vmem [thread:$0]  (!%p1335_p12), %s1498_s2, 2048, %s224_s15, [#allocation3], %s1232_s23, %s1232_s23, %s1233_s29  }
  0x20   : > { %s1126_s14 = scalar_lea.vmem %s237_s18, 2048  ;;  %p1134_p9 = scmp.lt.s32.totalorder %s237_s18, %s237_s18 }
  0x21   : > { %p1127_p11 = scmp.ne.s32.totalorder %s237_s18, %s1126_s14  ;;  %p1135_p6 = scmp.lt.s32.totalorder %s1126_s14, %s1126_s14 }
  0x23   : > { %p1129_p0 = pnand %p1127_p11, %p1091_p13  ;;  %p1136_p3 = por %p1135_p6, %p1134_p9 }
  0x25   : > { %p1130_p1 = pneg %p1129_p0 }
  0x27   : > { %p1137_p2 = pnand %p1136_p3, %p1130_p1 }
  0x29   : > { %1140 = shalt.err (!%p1137_p2)
}
  0x2a   : > { %1031 = dma.hbm_to_vmem [thread:$0]  (!%p1335_p12), %s1499_s3, 2048, %s237_s18, [#allocation7], %s1232_s23, %s1232_s23, %s1233_s29  }
  0x2b   : > { %s1141_s15 = scalar_lea.vmem %s1342_s21, 16  ;;  %p1149_p6 = scmp.lt.s32.totalorder %s1342_s21, %s1342_s21 }
  0x2c   : > { %p1142_p4 = scmp.ne.s32.totalorder %s1342_s21, %s1141_s15  ;;  %p1150_p9 = scmp.lt.s32.totalorder %s1141_s15, %s1141_s15 }
  0x2e   : > { %p1144_p7 = pnand %p1142_p4, %p1091_p13  ;;  %p1151_p11 = por %p1150_p9, %p1149_p6 }
  0x30   : > { %p1145_p8 = pneg %p1144_p7 }
  0x32   : > { %p1152_p0 = pnand %p1151_p11, %p1145_p8 }
  0x34   : > { %1155 = shalt.err (!%p1152_p0)
}
  0x35   : > { %s1234_s20 = smov [#allocation8]   ;;  %283 = sbr.rel (%p1327_p10) target bundleno = 947 (0x3b3), region = 48 }
  0x36   : > { %1034 = dma.vmem_to_smem (!%p1335_p12), %s1342_s21, 16, %s1234_s20, [#allocation5]  }
  0x37   : > { %p1509_p1 = scmp.eq.s32.totalorder (!%p1327_p10), %s1299_s28, 0 }
  0x3a   : > { %1199 = dma.done.wait (%p1509_p1), [#allocation3], 2048   ;;  %p1510_p13 = pmov %p1509_p1 }
  0x3b   : > { %p1511_p3 = pmov %p1509_p1 }
  0x3c   : > { %1201 = vsyncadd (%p1510_p13), [#allocation3], 4294965248 }
  0x3d   : > { %1203 = dma.done.wait (%p1511_p3), [#allocation7], 2048   ;;  %p1512_p2 = pmov %p1509_p1 }
  0x3e   : > { %p1513_p4 = pmov %p1509_p1 }
  0x3f   : > { %1205 = vsyncadd (%p1512_p2), [#allocation7], 4294965248 }
  0x40   : > { %1207 = dma.done.wait (%p1513_p4), [#allocation5], 16   ;;  %p1514_p12 = pmov %p1509_p1 }
  0x42   : > { %1209 = vsyncadd (%p1514_p12), [#allocation5], 4294967280 }
  0x43   : > { %297 = sfence }
  0x44   : > { %p327_p10 = scmp.lt.s32.totalorder %s1299_s28, 1  ;;  %vm337_vm0 = vcmask 64512   ;;  %v346_v2 = vlaneseq  ;;  %v1235_v21 = vmov 0.0   ;;  %v555_v25 = vld [vmem:[#allocation2 + $0x78] sm:$0xff]  ;;  %v554_v27 = vld [vmem:[#allocation2 + $0x70] sm:$0xff]  ;;  %v553_v30 = vld [vmem:[#allocation2 + $0x68] sm:$0xff] }
  0x45   : > { %941 = vmatprep.subr.mxu0 %v1235_v21  ;;  %976 = vmatprep.subr.mxu1 %v1235_v21  ;;  %v552_v31 = vld [vmem:[#allocation2 + $0x60] sm:$0xff]  ;;  %v551_v33 = vld [vmem:[#allocation2 + $0x58] sm:$0xff]  ;;  %v550_v34 = vld [vmem:[#allocation2 + $0x50] sm:$0xff]  ;;  %vm1236_vm2 = vmmov 0   ;;  %vm564_vm11 = vcmask 1041409   ;;  %vm566_vm12 = vcmask 1042434  }
  0x46   : > { %s328_s13 = scalar_select %p327_p10, %s1299_s28, 1  ;;  %v1395_v3 = vshrl.u32 %v346_v2, 7  ;;  %942 = vmatpush3.msra.mxu0 %v555_v25  ;;  %v549_v36 = vld [vmem:[#allocation2 + $0x48] sm:$0xff]  ;;  %v548_v37 = vld [vmem:[#allocation2 + $0x40] sm:$0xff]  ;;  %v547_v39 = vld [vmem:[#allocation2 + $0x38] sm:$0xff]  ;;  %973 = vmatprep.mubr.msk.f32.mxu0 %vm1236_vm2, %v1235_v21  ;;  %vm568_vm13 = vcmask 1043459  }
  0x47   : > { %943 = vmatprep.subr.mxu0 %v1235_v21  ;;  %v546_v40 = vld [vmem:[#allocation2 + $0x30] sm:$0xff]  ;;  %v545_v42 = vld [vmem:[#allocation2 + $0x28] sm:$0xff]  ;;  %v544_v43 = vld [vmem:[#allocation2 + $0x20] sm:$0xff]  ;;  %1008 = vmatprep.mubr.msk.f32.mxu1 %vm1236_vm2, %v1235_v21  ;;  %vm570_vm14 = vcmask 1044484   ;;  %vm572_vm15 = vcmask 1045509   ;;  %s753_s15 = sld [smem:[#allocation8]] }
  0x48   : > { %s890_s16 = sshll.u32 %s328_s13, 3  ;;  %v357_v5 = vsub.s32 1, %v1395_v3  ;;  %v350_v7 = vsub.s32 0, %v1395_v3  ;;  %v364_v8 = vsub.s32 2, %v1395_v3  ;;  %v385_v11 = vsub.s32 5, %v1395_v3  ;;  %944 = vmatpush3.msra.mxu0 %v554_v27  ;;  %v543_v45 = vld [vmem:[#allocation2 + $0x18] sm:$0xff] }
  0x49   : > { %s334_s22 = scalar_lea.vmem %s1497_s1, %s890_s16  ;;  %s330_s8 = scalar_lea.vmem %s1496_s0, %s890_s16  ;;  %v371_v12 = vsub.s32 3, %v1395_v3  ;;  %v392_v15 = vsub.s32 6, %v1395_v3  ;;  %v378_v16 = vsub.s32 4, %v1395_v3  ;;  %v399_v19 = vsub.s32 7, %v1395_v3  ;;  %945 = vmatprep.subr.mxu0 %v1235_v21  ;;  %v542_v46 = vld [vmem:[#allocation2 + $0x10] sm:$0xff]  ;;  %v541_v48 = vld [vmem:[#allocation2 + $0x8] sm:$0xff] }
  0x4a   : > { %v336_v0 = vld [vmem:[%s334_s22] sm:$0xff]  ;;  %946 = vmatpush3.msra.mxu0 %v553_v30  ;;  %v664_v50 = vld [vmem:[#allocation6 + $0x78] sm:$0xff]  ;;  %v663_v51 = vld [vmem:[#allocation6 + $0x70] sm:$0xff]  ;;  %s324_s20 = sand.u32 1, %s1220_s25   ;;  %s902_s13 = sld [smem:[#allocation8 + $0x1]] }
  0x4b   : > { %v338_v1 = vsel %vm337_vm0, %v336_v0, 0.0  ;;  %v335_v4 = vld [vmem:[%s330_s8] sm:$0xff]  ;;  %947 = vmatprep.subr.mxu0 %v1235_v21  ;;  %977 = vmatpush3.msra.mxu1 %v664_v50  ;;  %v662_v52 = vld [vmem:[#allocation6 + $0x68] sm:$0xff]  ;;  %v660_v54 = vld [vmem:[#allocation6 + $0x58] sm:$0xff]  ;;  %vm574_vm0 = vcmask 1046534   ;;  %s889_s16 = sshll.u32 %s324_s20, 3 }
  0x4c   : > { %339 = vadd.xlane.f32.xlu0 %v338_v1  ;;  %v358_v6 = vrot.slane %v335_v4, %v357_v5  ;;  %v365_v9 = vrot.slane %v335_v4, %v364_v8  ;;  %v351_v10 = vrot.slane %v335_v4, %v350_v7  ;;  %v372_v13 = vrot.slane %v335_v4, %v371_v12  ;;  %v540_v49 = vld [vmem:[#allocation2] sm:$0xff]  ;;  %v659_v55 = vld [vmem:[#allocation6 + $0x50] sm:$0xff]  ;;  %v658_v56 = vld [vmem:[#allocation6 + $0x48] sm:$0xff]  ;;  %s904_s18 = sshll.u32 %s1299_s28, 7  ;;  %s326_s21 = scalar_lea.vmem [#allocation9], %s889_s16 }
  0x4d   : > { %v386_v14 = vrot.slane %v335_v4, %v385_v11  ;;  %v379_v17 = vrot.slane %v335_v4, %v378_v16  ;;  %v393_v18 = vrot.slane %v335_v4, %v392_v15  ;;  %v400_v20 = vrot.slane %v335_v4, %v399_v19  ;;  %948 = vmatpush3.msra.mxu0 %v552_v31  ;;  %v661_v53 = vld [vmem:[#allocation6 + $0x60] sm:$0xff]  ;;  %v656_v58 = vld [vmem:[#allocation6 + $0x38] sm:$0xff]  ;;  %v655_v59 = vld [vmem:[#allocation6 + $0x30] sm:$0xff]  ;;  %s774_s22 = sshll.u32 %s326_s21, 4  ;;  %s772_s8 = scalar_lea.hbm %s1503_s7, %s904_s18  ;;  %s775_s22 = int_to_ptr.vmem [resolvable:$true] %s774_s22 }
  0x4e   : > { %360 = vbcast.lane.b32.xlu1 %v358_v6, 256  ;;  %949 = vmatprep.subr.mxu0 %v1235_v21  ;;  %v657_v57 = vld [vmem:[#allocation6 + $0x40] sm:$0xff]  ;;  %v654_v60 = vld [vmem:[#allocation6 + $0x28] sm:$0xff]  ;;  %v652_v62 = vld [vmem:[#allocation6 + $0x18] sm:$0xff]  ;;  %s761_s9 = scalar_lea.sflag [#allocation4], %s324_s20  ;;  %s1156_s14 = scalar_lea.vmem %s775_s22, 128 }
  0x4f   : > { %950 = vmatpush3.msra.mxu0 %v551_v33  ;;  %978 = vmatprep.subr.mxu1 %v1235_v21  ;;  %v653_v61 = vld [vmem:[#allocation6 + $0x20] sm:$0xff]  ;;  %v651_v63 = vld [vmem:[#allocation6 + $0x10] sm:$0xff]  ;;  %p1157_p7 = scmp.ne.s32.totalorder %s775_s22, %s1156_s14  ;;  %s1237_s17 = smov [#allocation9]  }
  0x50   : > { %951 = vmatprep.subr.mxu0 %v1235_v21  ;;  %979 = vmatpush3.msra.mxu1 %v663_v51  ;;  %s1160_s19 = sshll.u32 %s1237_s17, 4  ;;  %s1161_s19 = int_to_ptr.vmem [resolvable:$false] %s1160_s19 }
  0x51   : > { %952 = vmatpush3.msra.mxu0 %v550_v34  ;;  %980 = vmatprep.subr.mxu1 %v1235_v21  ;;  %p1158_p8 = pnand %p1157_p7, %p1316_p5  ;;  %s1162_s28 = scalar_lea.vmem %s1161_s19, 256 }
  0x52   : > { %367 = vbcast.lane.b32.xlu1 %v365_v9, 256  ;;  %953 = vmatprep.subr.mxu0 %v1235_v21  ;;  %p1163_p9 = scmp.lt.s32.totalorder %s775_s22, %s1161_s19  ;;  %p1164_p11 = scmp.lt.s32.totalorder %s1162_s28, %s1156_s14 }
  0x53   : > { %954 = vmatpush3.msra.mxu0 %v549_v36  ;;  %981 = vmatpush3.msra.mxu1 %v662_v52  ;;  %p1159_p6 = pneg %p1158_p8 }
  0x54   : > { %955 = vmatprep.subr.mxu0 %v1235_v21  ;;  %982 = vmatprep.subr.mxu1 %v1235_v21  ;;  %p1165_p0 = por %p1164_p11, %p1163_p9 }
  0x55   : > { %956 = vmatpush3.msra.mxu0 %v548_v37  ;;  %983 = vmatpush3.msra.mxu1 %v661_v53 }
  0x56   : > { %374 = vbcast.lane.b32.xlu1 %v372_v13, 256  ;;  %957 = vmatprep.subr.mxu0 %v1235_v21  ;;  %p1166_p1 = pnand %p1165_p0, %p1159_p6 }
  0x57   : > { %958 = vmatpush3.msra.mxu0 %v547_v39  ;;  %984 = vmatprep.subr.mxu1 %v1235_v21 }
  0x58   : > { %959 = vmatprep.subr.mxu0 %v1235_v21  ;;  %985 = vmatpush3.msra.mxu1 %v660_v54 }
  0x59   : > { %960 = vmatpush3.msra.mxu0 %v546_v40  ;;  %986 = vmatprep.subr.mxu1 %v1235_v21 }
  0x5a   : > { %381 = vbcast.lane.b32.xlu1 %v379_v17, 256  ;;  %961 = vmatprep.subr.mxu0 %v1235_v21 }
  0x5b   : > { %962 = vmatpush3.msra.mxu0 %v545_v42  ;;  %987 = vmatpush3.msra.mxu1 %v659_v55 }
  0x5c   : > { %963 = vmatprep.subr.mxu0 %v1235_v21  ;;  %988 = vmatprep.subr.mxu1 %v1235_v21 }
  0x5d   : > { %964 = vmatpush3.msra.mxu0 %v544_v43  ;;  %989 = vmatpush3.msra.mxu1 %v658_v56 }
  0x5e   : > { %965 = vmatprep.subr.mxu0 %v1235_v21  ;;  %990 = vmatprep.subr.mxu1 %v1235_v21 }
  0x5f   : > { %966 = vmatpush3.msra.mxu0 %v543_v45  ;;  %991 = vmatpush3.msra.mxu1 %v657_v57 }
  0x60   : > { %967 = vmatprep.subr.mxu0 %v1235_v21  ;;  %992 = vmatprep.subr.mxu1 %v1235_v21 }
  0x61   : > { %968 = vmatpush3.msra.mxu0 %v542_v46  ;;  %993 = vmatpush3.msra.mxu1 %v656_v58 }
  0x62   : > { %353 = vbcast.lane.b32.xlu0 %v351_v10, 256  ;;  %969 = vmatprep.subr.mxu0 %v1235_v21 }
  0x63   : > { %970 = vmatpush3.msra.mxu0 %v541_v48  ;;  %994 = vmatprep.subr.mxu1 %v1235_v21 }
  0x64   : > { %971 = vmatprep.subr.mxu0 %v1235_v21  ;;  %995 = vmatpush3.msra.mxu1 %v655_v59 }
  0x65   : > { %972 = vmatpush3.msra.mxu0 %v540_v49  ;;  %996 = vmatprep.subr.mxu1 %v1235_v21 }
  0x66   : > { %388 = vbcast.lane.b32.xlu0 %v386_v14, 256  ;;  %997 = vmatpush3.msra.mxu1 %v654_v60 }
  0x67   : > { %998 = vmatprep.subr.mxu1 %v1235_v21 }
  0x68   : > { %999 = vmatpush3.msra.mxu1 %v653_v61 }
  0x69   : > { %1000 = vmatprep.subr.mxu1 %v1235_v21 }
  0x6a   : > { %395 = vbcast.lane.b32.xlu0 %v393_v18, 256  ;;  %1001 = vmatpush3.msra.mxu1 %v652_v62 }
  0x6b   : > { %1002 = vmatprep.subr.mxu1 %v1235_v21 }
  0x6c   : > { %1003 = vmatpush3.msra.mxu1 %v651_v63 }
  0x6d   : > { %1004 = vmatprep.subr.mxu1 %v1235_v21 }
  0x6e   : > { %402 = vbcast.lane.b32.xlu0 %v400_v20, 256 }
  0xc0   : > { %v361_v1 = vpop.permute.xlu1 %360 }
  0xc4   : > { %v368_v3 = vpop.permute.xlu1 %367 }
  0xd5   : > { %v340_v22 = vpop.xlane.xlu0 %339 }
  0xd6   : > { %vm341_vm1 = vcmp.gt.f32.partialorder %v340_v22, 0.0 }
  0xd7   : > { %v342_v23 = vsel %vm341_vm1, %v340_v22, 1.0  ;;  %vm576_vm1 = vcmask 1047559  }
  0xd8   : > { %1085 = vrcp.f32 %v342_v23 }
  0xd9   : > { %v354_v4 = vpop.permute.xlu0 %353 }
  0xdd   : > { %v389_v6 = vpop.permute.xlu0 %388 }
  0xe1   : > { %v396_v9 = vpop.permute.xlu0 %395 }
  0xe5   : > { %v1086_v24 = vpop.eup %1085 }
  0xe6   : > { %v345_v26 = vmul.f32 %v1086_v24, %v336_v0  ;;  %v650_v0 = vld [vmem:[#allocation6 + $0x8] sm:$0xff] }
  0xe7   : > { %1005 = vmatpush3.msra.mxu1 %v650_v0 }
  0xe8   : > { %v431_v28 = vrot.slane %v345_v26, %v350_v7  ;;  %v473_v29 = vrot.slane %v345_v26, %v392_v15  ;;  %v438_v32 = vrot.slane %v345_v26, %v357_v5  ;;  %v445_v35 = vrot.slane %v345_v26, %v364_v8  ;;  %1006 = vmatprep.subr.mxu1 %v1235_v21  ;;  %v375_v5 = vpop.permute.xlu1 %374 }
  0xe9   : > { %v452_v38 = vrot.slane %v345_v26, %v371_v12  ;;  %v459_v41 = vrot.slane %v345_v26, %v378_v16  ;;  %v466_v44 = vrot.slane %v345_v26, %v385_v11  ;;  %v480_v47 = vrot.slane %v345_v26, %v399_v19  ;;  %v403_v12 = vpop.permute.xlu0 %402 }
  0xea   : > { %433 = vbcast.lane.b32.xlu1 %v431_v28, 256  ;;  %475 = vbcast.lane.b32.xlu0 %v473_v29, 256  ;;  %v347_v8 = vand.u32 127, %v346_v2 }
  0xec   : > { %v382_v7 = vpop.permute.xlu1 %381  ;;  %vm404_vm3 = vcmp.eq.s32.totalorder %v354_v4, %v347_v8  ;;  %vm405_vm4 = vcmp.eq.s32.totalorder %v361_v1, %v347_v8  ;;  %vm406_vm5 = vcmp.eq.s32.totalorder %v368_v3, %v347_v8  ;;  %vm410_vm6 = vcmp.eq.s32.totalorder %v396_v9, %v347_v8 }
  0xed   : > { %v892_v11 = vsel %vm404_vm3, 1.0, %v1235_v21  ;;  %v893_v14 = vsel %vm405_vm4, 1.0, %v1235_v21  ;;  %v894_v19 = vsel %vm406_vm5, 1.0, %v1235_v21  ;;  %v898_v2 = vsel %vm410_vm6, 1.0, %v1235_v21 }
  0xee   : > { %440 = vbcast.lane.b32.xlu1 %v438_v32, 256  ;;  %vm407_vm7 = vcmp.eq.s32.totalorder %v375_v5, %v347_v8  ;;  %vm408_vm8 = vcmp.eq.s32.totalorder %v382_v7, %v347_v8  ;;  %vm409_vm9 = vcmp.eq.s32.totalorder %v389_v6, %v347_v8  ;;  %vm411_vm10 = vcmp.eq.s32.totalorder %v403_v12, %v347_v8 }
  0xef   : > { %v895_v30 = vsel %vm407_vm7, 1.0, %v1235_v21  ;;  %v896_v33 = vsel %vm408_vm8, 1.0, %v1235_v21  ;;  %v897_v43 = vsel %vm409_vm9, 1.0, %v1235_v21  ;;  %v899_v59 = vsel %vm411_vm10, 1.0, %v1235_v21 }
  0xf2   : > { %447 = vbcast.lane.b32.xlu1 %v445_v35, 256 }
  0xf6   : > { %454 = vbcast.lane.b32.xlu1 %v452_v38, 256 }
  0xfa   : > { %461 = vbcast.lane.b32.xlu1 %v459_v41, 256 }
  0xfe   : > { %468 = vbcast.lane.b32.xlu1 %v466_v44, 256 }
 0x102   : > { %482 = vbcast.lane.b32.xlu1 %v480_v47, 256 }
 0x15c   : > { %v434_v10 = vpop.permute.xlu1 %433  ;;  %v476_v22 = vpop.permute.xlu0 %475 }
 0x15d   : > { %v484_v13 = vmul.f32 %v892_v11, %v434_v10  ;;  %v490_v27 = vmul.f32 %v898_v2, %v476_v22 }
 0x15f   : > { %v492_v18 = vrot.slane %v484_v13, 4  ;;  %v528_v35 = vrot.slane %v490_v27, 4 }
 0x160   : > { %v441_v15 = vpop.permute.xlu1 %440 }
 0x161   : > { %v485_v16 = vmul.f32 %v893_v14, %v441_v15  ;;  %v493_v26 = vadd.f32 %v492_v18, %v484_v13  ;;  %v529_v45 = vadd.f32 %v528_v35, %v490_v27 }
 0x163   : > { %v498_v17 = vrot.slane %v485_v16, 4  ;;  %v494_v34 = vrot.slane %v493_v26, 2  ;;  %v530_v56 = vrot.slane %v529_v45, 2 }
 0x164   : > { %v448_v20 = vpop.permute.xlu1 %447 }
 0x165   : > { %v486_v23 = vmul.f32 %v894_v19, %v448_v20  ;;  %v499_v24 = vadd.f32 %v498_v17, %v485_v16  ;;  %v495_v44 = vadd.f32 %v494_v34, %v493_v26  ;;  %v531_v5 = vadd.f32 %v530_v56, %v529_v45  ;;  %v649_v26 = vld [vmem:[#allocation6] sm:$0xff] }
 0x166   : > { %1007 = vmatpush3.msra.mxu1 %v649_v26 }
 0x167   : > { %v504_v25 = vrot.slane %v486_v23, 4  ;;  %v500_v32 = vrot.slane %v499_v24, 2  ;;  %v496_v55 = vrot.slane %v495_v44, 1  ;;  %v532_v14 = vrot.slane %v531_v5, 1 }
 0x168   : > { %v455_v28 = vpop.permute.xlu1 %454 }
 0x169   : > { %v505_v29 = vadd.f32 %v504_v25, %v486_v23  ;;  %v487_v31 = vmul.f32 %v895_v30, %v455_v28  ;;  %v501_v41 = vadd.f32 %v500_v32, %v499_v24  ;;  %v497_v7 = vadd.f32 %v496_v55, %v495_v44 }
 0x16a   : > { %v533_v22 = vadd.f32 %v532_v14, %v531_v5 }
 0x16b   : > { %v506_v36 = vrot.slane %v505_v29, 2  ;;  %v510_v37 = vrot.slane %v487_v31, 4  ;;  %v502_v52 = vrot.slane %v501_v41, 1 }
 0x16c   : > { %v462_v38 = vpop.permute.xlu1 %461 }
 0x16d   : > { %v488_v39 = vmul.f32 %v896_v33, %v462_v38  ;;  %v511_v40 = vadd.f32 %v510_v37, %v487_v31  ;;  %v507_v46 = vadd.f32 %v506_v36, %v505_v29  ;;  %v503_v0 = vadd.f32 %v502_v52, %v501_v41  ;;  %v900_v29 = vld [vmem:[%s1500_s4] ss:$0 sm:$0xff] }
 0x16e   : > { %v901_v33 = vld [vmem:[%s1501_s5] ss:$0 sm:$0xff]  ;;  %v754_v36 = vstv %s753_s15  ;;  %v757_v37 = vstv %s902_s13 }
 0x16f   : > { %v516_v42 = vrot.slane %v488_v39, 4  ;;  %v512_v47 = vrot.slane %v511_v40, 2  ;;  %v508_v57 = vrot.slane %v507_v46, 1  ;;  %v565_v12 = vsel %vm564_vm11, %v503_v0, %v497_v7 }
 0x170   : > { %v469_v48 = vpop.permute.xlu1 %468 }
 0x171   : > { %v517_v49 = vadd.f32 %v516_v42, %v488_v39  ;;  %v489_v50 = vmul.f32 %v897_v43, %v469_v48  ;;  %v513_v51 = vadd.f32 %v512_v47, %v511_v40  ;;  %v509_v6 = vadd.f32 %v508_v57, %v507_v46 }
 0x173   : > { %v518_v53 = vrot.slane %v517_v49, 2  ;;  %v522_v54 = vrot.slane %v489_v50, 4  ;;  %v514_v60 = vrot.slane %v513_v51, 1  ;;  %v567_v15 = vsel %vm566_vm12, %v509_v6, %v565_v12 }
 0x174   : > { %v483_v58 = vpop.permute.xlu1 %482 }
 0x175   : > { %v519_v61 = vadd.f32 %v518_v53, %v517_v49  ;;  %v523_v62 = vadd.f32 %v522_v54, %v489_v50  ;;  %v491_v63 = vmul.f32 %v899_v59, %v483_v58  ;;  %v515_v8 = vadd.f32 %v514_v60, %v513_v51 }
 0x177   : > { %v520_v1 = vrot.slane %v519_v61, 1  ;;  %v524_v3 = vrot.slane %v523_v62, 2  ;;  %v534_v4 = vrot.slane %v491_v63, 4  ;;  %v569_v18 = vsel %vm568_vm13, %v515_v8, %v567_v15 }
 0x179   : > { %v525_v9 = vadd.f32 %v524_v3, %v523_v62  ;;  %v535_v10 = vadd.f32 %v534_v4, %v491_v63  ;;  %v521_v11 = vadd.f32 %v520_v1, %v519_v61 }
 0x17b   : > { %v526_v21 = vrot.slane %v525_v9, 1  ;;  %v536_v13 = vrot.slane %v535_v10, 2  ;;  %v571_v19 = vsel %vm570_vm14, %v521_v11, %v569_v18 }
 0x17d   : > { %v527_v16 = vadd.f32 %v526_v21, %v525_v9  ;;  %v537_v17 = vadd.f32 %v536_v13, %v535_v10 }
 0x17f   : > { %v538_v20 = vrot.slane %v537_v17, 1  ;;  %v573_v2 = vsel %vm572_vm15, %v527_v16, %v571_v19 }
 0x180   : > { %v575_v24 = vsel %vm574_vm0, %v533_v22, %v573_v2 }
 0x181   : > { %v539_v23 = vadd.f32 %v538_v20, %v537_v17 }
 0x183   : > { %v577_v25 = vsel %vm576_vm1, %v539_v23, %v575_v24 }
 0x184   : > { %974 = vmatmul.mubr.f32.vlgmr.msra.gmra.mxu0 %v577_v25 }
 0x244   : > { %v645_v27 = vpop.f32.mrf.mxu0 }
 0x245   : > { %1009 = vmatmul.mubr.f32.vlgmr.msra.gmra.mxu1 %v645_v27 }
 0x246   : > { %v975_v28 = vpop.f32.mrf.mxu0 }
 0x305   : > { %v738_v30 = vpop.f32.mrf.mxu1 }
 0x306   : > { %v739_v31 = vadd.f32 %v900_v29, %v738_v30 }
 0x307   : > { %v1010_v32 = vpop.f32.mrf.mxu1 }
 0x308   : > { %1087 = vtanh.f32 %v739_v31 }
 0x315   : > { %v1088_v34 = vpop.eup %1087 }
 0x316   : > { %v750_v35 = vmul.f32 %v1088_v34, %v901_v33 }
 0x318   : > { %751 = vadd.xlane.f32.xlu0 %v750_v35 }
 0x3a1   : > { %v752_v38 = vpop.xlane.xlu0 %751 }
 0x3a2   : > { %v755_v39 = vadd.f32 %v754_v36, %v752_v38 }
 0x3a4   : > { %v758_v40 = vmul.f32 %v757_v37, %v755_v39 }
 0x3a6   : > { %759 = vst [vmem:[%s326_s21] sm:$0xff] %v758_v40 }
 0x3a7   : > { %1169 = shalt.err (!%p1166_p1)
}
 0x3a8   : > { %s1170_s15 = scalar_lea.hbm %s772_s8, 128  ;;  %s1174_s16 = scalar_lea.hbm %s1503_s7, 256 }
 0x3a9   : > { %p1171_p13 = scmp.ne.s32.totalorder %s772_s8, %s1170_s15  ;;  %p1175_p4 = scmp.lt.s32.totalorder %s772_s8, %s1503_s7 }
 0x3aa   : > { %p1176_p12 = scmp.lt.s32.totalorder %s1174_s16, %s1170_s15 }
 0x3ab   : > { %p1172_p3 = pnand %p1171_p13, %p1316_p5 }
 0x3ac   : > { %p1177_p10 = por %p1176_p12, %p1175_p4 }
 0x3ad   : > { %p1173_p2 = pneg %p1172_p3 }
 0x3af   : > { %p1178_p7 = pnand %p1177_p10, %p1173_p2 }
 0x3b1   : > { %1181 = shalt.err (!%p1178_p7)
}
 0x3b2   : > { %1023 = dma.vmem_to_hbm [thread:$0]  (%p1316_p5), %s775_s22, 128, %s772_s8, %s761_s9  }
 0x3b3 PF: > { %p1045_p8 = scmp.ge.s32.totalorder %s1228_s27, 2  ;;  %s786_s23 = sand.u32 1, %s1216_s24  }
 0x3b4   : > { %p1515_p6 = scmp.ne.s32.totalorder %s1506_s12, 0  ;;  %s787_s29 = scalar_lea.sflag [#allocation4], %s786_s23 }
 0x3b6   : > { %p1036_p9 = pnand %p1045_p8, %p1515_p6 }
 0x3b8   : > { %p1037_p11 = pneg %p1036_p9 }
 0x3ba   : > { %1211 = dma.done.wait (%p1037_p11), %s787_s29, 128  }
 0x3bb   : > { %1213 = vsyncadd (%p1037_p11), %s787_s29, 4294967168  ;;  %p20_p0 = scmp.ge.s32.totalorder %s1303_s30, 4   ;;  %s1516_s24 = smov %s1220_s25 }
 0x3bc   : > { %s1517_s25 = smov %s1224_s26  ;;  %s1518_s26 = smov %s1314_s10 }
 0x3bd   : > { %s1519_s27 = smov %s1303_s30  ;;  %22 = sbr.rel (!%p20_p0) target bundleno = 6 (0x6), region = 100 }
 0x3c2   :  { %792 = vsyncpa [#allocation3], 1 }
 0x3c3   :  { %794 = vsyncpa [#allocation3 + $0x1], 1 }
 0x3c4   :  { %795 = vsyncpa [#allocation7], 1 }
 0x3c5   :  { %796 = vsyncpa [#allocation4], 1 }
 0x3c6   :  { %798 = vsyncpa [#allocation4 + $0x1], 1 }
 0x3c7   :  { %799 = vsyncpa [#allocation5], 1 }
 0x3c8   :  { %801 = vsyncpa [#allocation5 + $0x1], 1 }

</bundles_post_ra>
